<compile_context>
chip_gen: v5e
topology: v5e:2x2
jax: 0.10.0
libtpu: 0.0.40
codegen_flags: <defaults>
</compile_context>

<pallas_src>
import jax
import jax.numpy as jnp
from jax.experimental import pallas as pl
from jax.experimental.pallas import tpu as pltpu


def _layer_sizes(input_size, num_hidden_layers=2):
    """Replicates MLPModel.__init__ layer-size logic."""
    layer_sizes = [max(64, input_size // 2 ** (i + 1)) for i in range(num_hidden_layers)]
    if num_hidden_layers >= 1:
        layer_sizes[0] = max(128, layer_sizes[0])
    return [max(1, s) for s in layer_sizes]


def _pick_tm(batch, tm_request):
    """Pick a batch-tile size: multiple of 128, <= rounded-up batch, and small
    enough to give >=4 grid steps when the batch allows (v7x megacore: at
    least 2 tiles per TensorCore, so each core still double-buffers its DMA)."""
    b_up = -(-batch // 128) * 128                     # batch rounded up to 128
    tm = max(128, (tm_request // 128) * 128)
    quarter_cap = max(128, ((batch // 4) // 128) * 128)
    return max(128, min(tm, b_up, quarter_cap))


def _vmem_budget_bytes(tm, f, h1, h2, x_itemsize):
    """Rough live-set estimate (double-buffered x + f32 intermediates +
    resident weights + double-buffered (1, tm) output), 2x headroom,
    clamped to 8..32 MiB (fits v7x 32 MiB scoped; overrides v5e's 16 MiB)."""
    xbuf = 2 * tm * f * x_itemsize
    inter = tm * h1 * 4 + tm * h2 * 4
    wts = (f * h1 + h1 * h2 + h2) * 2 + (h1 + h2) * 4
    out = 2 * tm * 4
    need = xbuf + inter + wts + out
    return int(min(max(2 * need, 8 * 1024 * 1024), 32 * 1024 * 1024))


def mlp_kernel(x_ref, w1_ref, b1_ref, w2_ref, b2_ref, w3_ref, o_ref):
    """One (TM, F) batch tile through the whole MLP; writes a (1, TM) row."""
    # In-kernel bf16 cast (no separate wrapper-side HBM pass over x).
    x = x_ref[...].astype(jnp.bfloat16)
    # Layer 0: bf16 MXU matmul, f32 accumulate; bias + ReLU in f32.
    h = jnp.dot(x, w1_ref[...], preferred_element_type=jnp.float32)
    h = jnp.maximum(h + b1_ref[...], 0.0)          # dropout = identity (eval)
    # Layer 1.
    h = jnp.dot(h.astype(jnp.bfloat16), w2_ref[...],
                preferred_element_type=jnp.float32)
    h = jnp.maximum(h + b2_ref[...], 0.0)          # dropout = identity (eval)
    # Output head, lane-dense: (1, H2) contracted against (TM, H2) -> (1, TM),
    # stored as a full-lane row (no masked width-1 column stores).  b3 is
    # added in the wrapper.
    # (Per review: off the critical path; verify via pl.lower_as_mlir at very
    #  large TM that no whole-tile XLU transpose of h is materialized.)
    out = jax.lax.dot_general(
        w3_ref[...], h.astype(jnp.bfloat16),
        dimension_numbers=(((1,), (1,)), ((), ())),
        preferred_element_type=jnp.float32)        # (1, TM)
    o_ref[...] = out.astype(o_ref.dtype)


def mlp_forward(x, params, *, tm=2048, x_buffers=2):
    """x: (B, F) in f32 or bf16; params from init_params.  Returns (B, 1) f32."""
    B, F = x.shape
    tm = _pick_tm(B, tm)
    num_tiles = pl.cdiv(B, tm)          # ragged tail handled by partial blocks

    # Small weights cast to bf16 once; they stay VMEM-resident (constant
    # index_maps) across all grid steps.
    w1 = params["w1"].astype(jnp.bfloat16)
    w2 = params["w2"].astype(jnp.bfloat16)
    w3_row = params["w3"].reshape(1, -1).astype(jnp.bfloat16)   # (1, H2)
    b1 = params["b1"].astype(jnp.float32)
    b2 = params["b2"].astype(jnp.float32)
    b3 = params["b3"].astype(jnp.float32)                        # (1, 1), added post-kernel

    h1 = w1.shape[1]
    h2 = w2.shape[1]

    def resident(shape):
        # Whole-array block with a constant index_map: fetched once, then
        # stays VMEM-resident across all grid steps.
        return pl.BlockSpec(shape, lambda i: tuple(0 for _ in shape))

    x_spec_kwargs = {}
    if x_buffers != 2:
        # Optional deeper pipelining sweep once grid-step overhead is amortized.
        x_spec_kwargs["pipeline_mode"] = pl.Buffered(x_buffers)
    x_spec = pl.BlockSpec((tm, F), lambda i: (i, 0), **x_spec_kwargs)

    out_slab = pl.pallas_call(
        mlp_kernel,
        out_shape=jax.ShapeDtypeStruct((1, B), jnp.float32),
        grid_spec=pltpu.PrefetchScalarGridSpec(
            num_scalar_prefetch=0,
            grid=(num_tiles,),
            in_specs=[
                x_spec,                                    # x: batch-tiled, stored dtype
                resident((F, h1)), resident((1, h1)),      # w1, b1
                resident((h1, h2)), resident((1, h2)),     # w2, b2
                resident((1, h2)),                         # w3 row
            ],
            out_specs=pl.BlockSpec((1, tm), lambda i: (0, i)),
        ),
        compiler_params=pltpu.CompilerParams(
            dimension_semantics=("parallel",),             # megacore sharding on v7x
            vmem_limit_bytes=_vmem_budget_bytes(tm, F, h1, h2, x.dtype.itemsize),
        ),
    )(x, w1, b1, w2, b2, w3_row)

    # b3 scalar add done here (cheap (B,1) op) instead of a resident (1,1) block.
    return out_slab[0, :].reshape(B, 1) + b3


def init_params(key, input_size, num_hidden_layers=2):
    """Deterministic init mimicking nn.Linear default (uniform +/- 1/sqrt(fan_in)).

    Weights are stored as (in_features, out_features), biases as (1, out)."""
    sizes = _layer_sizes(input_size, num_hidden_layers)
    dims = [input_size] + sizes + [1]  # e.g. 256 -> 128 -> 64 -> 1
    params = {}
    for i in range(len(dims) - 1):
        fan_in, fan_out = dims[i], dims[i + 1]
        key, kw, kb = jax.random.split(key, 3)
        bound = 1.0 / jnp.sqrt(jnp.float32(fan_in))
        params[f"w{i + 1}"] = jax.random.uniform(
            kw, (fan_in, fan_out), jnp.float32, -bound, bound)
        params[f"b{i + 1}"] = jax.random.uniform(
            kb, (1, fan_out), jnp.float32, -bound, bound)
    return params


def mlp_reference(x, params):
    """Pure-JAX reference mirroring the kernel's bf16-matmul / f32-epilogue math."""
    bf16, f32 = jnp.bfloat16, jnp.float32
    h = jnp.dot(x.astype(bf16), params["w1"].astype(bf16), preferred_element_type=f32)
    h = jnp.maximum(h + params["b1"], 0.0)
    h = jnp.dot(h.astype(bf16), params["w2"].astype(bf16), preferred_element_type=f32)
    h = jnp.maximum(h + params["b2"], 0.0)
    out = jnp.dot(h.astype(bf16), params["w3"].astype(bf16), preferred_element_type=f32)
    return out + params["b3"]


if __name__ == "__main__":
    INPUT_SIZE = 256   # -> hidden sizes [128, 64] per the module's formula
    BATCH = 200        # not a multiple of 128: exercises the ragged-tail path

    key = jax.random.PRNGKey(0)
    key_x, key_p = jax.random.split(key)

    x = jax.random.normal(key_x, (BATCH, INPUT_SIZE), dtype=jnp.float32)
    params = init_params(key_p, INPUT_SIZE, num_hidden_layers=2)

    # Small demo batch -> the auto-picker clamps tm to 128 (2 grid steps,
    # ragged second tile).  Production batches default to tm=2048 (hundreds
    # of tiles), amortizing the ~0.35 us per-grid-step overhead.
    out = jax.block_until_ready(mlp_forward(x, params, tm=2048))
    ref = mlp_reference(x, params)

    assert out.shape == (BATCH, 1), out.shape
    assert jnp.allclose(out, ref, atol=1e-3, rtol=1e-3), (
        "mismatch vs reference, max abs err = %g"
        % float(jnp.max(jnp.abs(out - ref))))

    print("KERNEL_OK")
</pallas_src>

<mosaic_0001>
module attributes {stable_mosaic.version = 11 : i64} {
  func.func @mlp_kernel(%arg0: i32, %arg1: memref<128x256xf32, #tpu.memory_space<vmem>>, %arg2: memref<256x128xbf16, #tpu.memory_space<vmem>>, %arg3: memref<1x128xf32, #tpu.memory_space<vmem>>, %arg4: memref<128x64xbf16, #tpu.memory_space<vmem>>, %arg5: memref<1x64xf32, #tpu.memory_space<vmem>>, %arg6: memref<1x64xbf16, #tpu.memory_space<vmem>>, %arg7: memref<1x128xf32, #tpu.memory_space<vmem>>) attributes {dimension_semantics = [#tpu.dimension_semantics<parallel>], iteration_bounds = array<i64: 2>, scalar_prefetch = 0 : i64, scratch_operands = 0 : i64, tpu.core_type = #tpu.core_type<tc>, window_params = [{transform_indices = @transform_0, window_bounds = array<i64: 128, 256>}, {pipeline_mode = #tpu.pipeline_mode<synchronous>, transform_indices = @transform_1, window_bounds = array<i64: 256, 128>}, {pipeline_mode = #tpu.pipeline_mode<synchronous>, transform_indices = @transform_2, window_bounds = array<i64: 1, 128>}, {pipeline_mode = #tpu.pipeline_mode<synchronous>, transform_indices = @transform_3, window_bounds = array<i64: 128, 64>}, {pipeline_mode = #tpu.pipeline_mode<synchronous>, transform_indices = @transform_4, window_bounds = array<i64: 1, 64>}, {pipeline_mode = #tpu.pipeline_mode<synchronous>, transform_indices = @transform_5, window_bounds = array<i64: 1, 64>}, {transform_indices = @transform_6, window_bounds = array<i64: 1, 128>}]} {
    %c0 = arith.constant 0 : index
    %c0_0 = arith.constant 0 : index
    %0 = vector.load %arg1[%c0, %c0_0] : memref<128x256xf32, #tpu.memory_space<vmem>>, vector<128x256xf32>
    %1 = arith.truncf %0 : vector<128x256xf32> to vector<128x256xbf16>
    %c0_1 = arith.constant 0 : index
    %c0_2 = arith.constant 0 : index
    %2 = vector.load %arg2[%c0_1, %c0_2] : memref<256x128xbf16, #tpu.memory_space<vmem>>, vector<256x128xbf16>
    %cst = arith.constant dense<0.000000e+00> : vector<128x128xf32>
    %3 = tpu.matmul %1, %2, %cst {dimension_numbers = #tpu.dot_dimension_numbers<[1], [0], [0], [1], [0, 0, 1, 1], [], []>} : vector<128x256xbf16>, vector<256x128xbf16>, vector<128x128xf32> -> vector<128x128xf32>
    %c0_3 = arith.constant 0 : index
    %c0_4 = arith.constant 0 : index
    %4 = vector.load %arg3[%c0_3, %c0_4] : memref<1x128xf32, #tpu.memory_space<vmem>>, vector<1x128xf32>
    %5 = vector.broadcast %4 : vector<1x128xf32> to vector<128x128xf32>
    %6 = arith.addf %3, %5 : vector<128x128xf32>
    %cst_5 = arith.constant 0.000000e+00 : f32
    %7 = vector.broadcast %cst_5 : f32 to vector<128x128xf32>
    %8 = arith.maximumf %6, %7 : vector<128x128xf32>
    %9 = arith.truncf %8 : vector<128x128xf32> to vector<128x128xbf16>
    %c0_6 = arith.constant 0 : index
    %c0_7 = arith.constant 0 : index
    %10 = vector.load %arg4[%c0_6, %c0_7] : memref<128x64xbf16, #tpu.memory_space<vmem>>, vector<128x64xbf16>
    %cst_8 = arith.constant dense<0.000000e+00> : vector<128x64xf32>
    %11 = tpu.matmul %9, %10, %cst_8 {dimension_numbers = #tpu.dot_dimension_numbers<[1], [0], [0], [1], [0, 0, 1, 1], [], []>} : vector<128x128xbf16>, vector<128x64xbf16>, vector<128x64xf32> -> vector<128x64xf32>
    %c0_9 = arith.constant 0 : index
    %c0_10 = arith.constant 0 : index
    %12 = vector.load %arg5[%c0_9, %c0_10] : memref<1x64xf32, #tpu.memory_space<vmem>>, vector<1x64xf32>
    %13 = vector.broadcast %12 : vector<1x64xf32> to vector<128x64xf32>
    %14 = arith.addf %11, %13 : vector<128x64xf32>
    %cst_11 = arith.constant 0.000000e+00 : f32
    %15 = vector.broadcast %cst_11 : f32 to vector<128x64xf32>
    %16 = arith.maximumf %14, %15 : vector<128x64xf32>
    %c0_12 = arith.constant 0 : index
    %c0_13 = arith.constant 0 : index
    %17 = vector.load %arg6[%c0_12, %c0_13] : memref<1x64xbf16, #tpu.memory_space<vmem>>, vector<1x64xbf16>
    %18 = arith.truncf %16 : vector<128x64xf32> to vector<128x64xbf16>
    %cst_14 = arith.constant dense<0.000000e+00> : vector<1x128xf32>
    %19 = tpu.matmul %17, %18, %cst_14 {dimension_numbers = #tpu.dot_dimension_numbers<[1], [1], [0], [0], [0, 0, 1, 0], [], []>} : vector<1x64xbf16>, vector<128x64xbf16>, vector<1x128xf32> -> vector<1x128xf32>
    %c0_15 = arith.constant 0 : index
    %c0_16 = arith.constant 0 : index
    %20 = vector.load %arg7[%c0_15, %c0_16] : memref<1x128xf32, #tpu.memory_space<vmem>>, vector<1x128xf32>
    tpu.vector_store %arg7[%c0_15, %c0_16], %19 {strides = array<i32>} : memref<1x128xf32, #tpu.memory_space<vmem>>, vector<1x128xf32>,
    return
  }
  func.func @transform_0(%arg0: i32) -> (i32, i32) {
    %c0_i32 = arith.constant 0 : i32
    %c0_i32_0 = arith.constant 0 : i32
    return %arg0, %c0_i32 : i32, i32
  }
  func.func @transform_1(%arg0: i32) -> (i32, i32) {
    %c0_i32 = arith.constant 0 : i32
    %c0_i32_0 = arith.constant 0 : i32
    %c0_i32_1 = arith.constant 0 : i32
    return %c0_i32, %c0_i32_0 : i32, i32
  }
  func.func @transform_2(%arg0: i32) -> (i32, i32) {
    %c0_i32 = arith.constant 0 : i32
    %c0_i32_0 = arith.constant 0 : i32
    %c0_i32_1 = arith.constant 0 : i32
    return %c0_i32, %c0_i32_0 : i32, i32
  }
  func.func @transform_3(%arg0: i32) -> (i32, i32) {
    %c0_i32 = arith.constant 0 : i32
    %c0_i32_0 = arith.constant 0 : i32
    %c0_i32_1 = arith.constant 0 : i32
    return %c0_i32, %c0_i32_0 : i32, i32
  }
  func.func @transform_4(%arg0: i32) -> (i32, i32) {
    %c0_i32 = arith.constant 0 : i32
    %c0_i32_0 = arith.constant 0 : i32
    %c0_i32_1 = arith.constant 0 : i32
    return %c0_i32, %c0_i32_0 : i32, i32
  }
  func.func @transform_5(%arg0: i32) -> (i32, i32) {
    %c0_i32 = arith.constant 0 : i32
    %c0_i32_0 = arith.constant 0 : i32
    %c0_i32_1 = arith.constant 0 : i32
    return %c0_i32, %c0_i32_0 : i32, i32
  }
  func.func @transform_6(%arg0: i32) -> (i32, i32) {
    %c0_i32 = arith.constant 0 : i32
    %c0_i32_0 = arith.constant 0 : i32
    return %c0_i32, %arg0 : i32, i32
  }
}

</mosaic_0001>

<bundles_post_ra>
// kernel: tpu_custom_call.1
= control target key start
LH: loop header
LB: loop body
LE: loop exit
PB: predicated region body
PF: predicated region fallthrough
CT: control target
= control target key end

     0   :  { %s1526_s0 = inlined_call_operand.hbm [shape: f32[200,256], index: 0, kind: input, shape index: {}]   ;;  %s1527_s1 = inlined_call_operand.hbm [shape: bf16[256,128], index: 1, kind: input, shape index: {}]   ;;  %s1528_s2 = inlined_call_operand.vmem [shape: f32[1,128], index: 2, kind: input, shape index: {}]   ;;  %s1529_s3 = inlined_call_operand.vmem [shape: bf16[128,64], index: 3, kind: input, shape index: {}]   ;;  %s1530_s4 = inlined_call_operand.vmem [shape: f32[1,64], index: 4, kind: input, shape index: {}]   ;;  %s1531_s5 = inlined_call_operand.vmem [shape: bf16[1,64], index: 5, kind: input, shape index: {}]   ;;  %s1532_s6 = inlined_call_operand.hbm [shape: f32[1,200], index: 6, kind: output, shape index: {}]  }
   0x1   :  { %1536 = sst [smem:[#allocation12_spill]] %s1527_s1 }
   0x2   :  { %11 = vsyncpa [#allocation3], 0 }
   0x3   :  { %13 = vsyncpa [#allocation3 + $0x1], 0 }
   0x4   :  { %14 = vsyncpa [#allocation6], 0 }
   0x5   :  { %15 = vsyncpa [#allocation4], 0 }
   0x6   :  { %17 = vsyncpa [#allocation4 + $0x1], 0  ;;  %s1259_s21 = smov 0   ;;  %s1261_s22 = smov 0  }
   0x7   :  { %s1263_s23 = smov 0   ;;  %s1265_s24 = smov 0  }
   0x8 LB: > { %s1280_s25 = sadd.s32 4294967295, %s1216_s24   ;;  %s878_s26 = sadd.s32 4294967294, %s1216_s24   ;;  %s1216_s24 = sphi %s1265_s24, %s1554_s24   ;;  %s1212_s23 = sphi %s1263_s23, %s1553_s23   ;;  %s1208_s22 = sphi %s1261_s22, %s1552_s22   ;;  %s1204_s21 = sphi %s1259_s21, %s1551_s21  }
   0x9   : > { %s1284_s27 = sadd.s32 1, %s1216_s24   ;;  %s30_s28 = sadd.s32 1, %s1212_s23 }
   0xa   : > { %s27_s29 = ssub.s32 %s1216_s24, %s1284_s27  ;;  %p37_p0 = scmp.ne.s32.totalorder %s1212_s23, %s1208_s22 }
   0xb   : > { %p28_p1 = scmp.eq.s32.totalorder %s27_s29, 0  ;;  %p38_p2 = scmp.eq.s32.totalorder %s1216_s24, 0 }
   0xc   : > { %p43_p3 = scmp.ne.s32.totalorder %s1208_s22, %s1204_s21  ;;  %p1535_p4 = scmp.eq.s32.totalorder %s1280_s25, 0 }
   0xd   : > { %s1296_s30 = scalar_select %p28_p1, %s1212_s23, %s30_s28  }
   0xe   : > { %p1298_p5 = por %p38_p2, %p37_p0  ;;  %p1304_p6 = por %p1535_p4, %p43_p3 }
   0xf   : > { %1537 = sst [smem:[#allocation11_spill]] %s1296_s30  ;;  %p172_p7 = scmp.eq.s32.totalorder %s1280_s25, 1 }
  0x10   : > { %p178_p8 = scmp.eq.s32.totalorder %s878_s26, 1  ;;  %p879_p9 = scmp.ge.s32.totalorder %s1216_s24, 1 }
  0x11   : > { %p185_p10 = scmp.lt.s32.totalorder %s1216_s24, 3  ;;  %p1311_p11 = por %p172_p7, %p37_p0 }
  0x12   : > { %p1315_p12 = por %p178_p8, %p43_p3  ;;  %s1543_s1 = sld [smem:[#allocation12_spill]] }
  0x13   : > { %p1319_p13 = pnand %p879_p9, %p185_p10  ;;  %s1218_s15 = smov [#allocation5]  }
  0x14   : > { %s1541_s10 = scalar_select %p1315_p12, 1, 0 }
  0x15   : > { %p1027_p1 = pneg %p1319_p13  ;;  %s198_s16 = sshll.u32 %s1218_s15, 4  ;;  %s199_s16 = int_to_ptr.vmem [resolvable:$true] %s198_s16 }
  0x16   : > { %s1219_s17 = smov 64   ;;  %s1220_s18 = smov 4  }
  0x17   : > { %p1028_p0 = pnand %p1027_p1, %p1535_p4  ;;  %p1534_p2 = scmp.ge.s32.totalorder %s1216_s24, 2 }
  0x18   : > { %s196_s14 = sshll.u32 %s1543_s1, 4  ;;  %s197_s14 = int_to_ptr.hbm [resolvable:$true] %s196_s14 }
  0x19   : > { %1030 = dma.hbm_to_vmem [thread:$0]  (!%p1028_p0), %s197_s14, 2048, %s199_s16, [#allocation6], %s1219_s17, %s1219_s17, %s1220_s18  }
  0x1a   : > { %220 = sbr.rel (%p1534_p2) target bundleno = 68 (0x44), region = 36 }
  0x1f   : > { %223 = sbr.rel (!%p1298_p5) target bundleno = 68 (0x44), region = 40  ;;  %s224_s19 = sand.u32 (%p1298_p5), 1, %s1212_s23  }
  0x20   : > { %s883_s20 = sshll.u32 (%p1298_p5), %s1216_s24, 4  ;;  %s882_s26 = sshll.u32 (%p1298_p5), %s224_s19, 8 }
  0x21   : > { %s230_s28 = ssub.s32 (%p1298_p5), 25, %s883_s20  ;;  %s1340_s14 = scalar_lea.sflag (%p1298_p5), [#allocation3], %s224_s19 }
  0x22   : > { %p231_p3 = scmp.lt.s32.totalorder (%p1298_p5), %s230_s28, 16  ;;  %s228_s15 = scalar_lea.vmem (%p1298_p5), [#allocation2], %s882_s26 }
  0x24   : > { %s1556_s28 = smov (!%p231_p3, %s230_s28), 16 }
  0x25   : > { %s993_s29 = sshll.u32 %s1556_s28, 4 }
  0x26   : > { %s235_s12 = ssub.s32 256, %s993_s29 }
  0x27   : > { %s236_s13 = sshll.u32 %s235_s12, 4 }
  0x28   : > { %237 = vsyncadd %s1340_s14, %s236_s13  ;;  %p1343_p5 = scmp.ne.s32.totalorder %s993_s29, 0  ;;  %s995_s16 = sshll.u32 %s1216_s24, 8 }
  0x29   : > { %s241_s20 = scalar_lea.hbm %s1526_s0, %s995_s16  ;;  %s1351_s1 = sshll.u32 %s228_s15, 4  ;;  %s246_s1 = int_to_ptr.vmem [resolvable:$true] %s1351_s1 }
  0x2a   : > { %s243_s19 = sshll.u32 %s241_s20, 4  ;;  %s1533_s26 = sshll.u32 %s1556_s28, 8  ;;  %s1354_s19 = int_to_ptr.hbm [resolvable:$true] %s243_s19 }
  0x2b   : > { %s1107_s12 = sshra.s32 %s1354_s19, 4  ;;  %s1109_s29 = sshrl.u32 %s1533_s26, 4  ;;  %s1108_s12 = int_to_ptr.hbm [resolvable:$true] %s1107_s12 }
  0x2c   : > { %s1114_s13 = scalar_lea.hbm %s1108_s12, %s1109_s29  ;;  %s1118_s15 = scalar_lea.hbm %s1526_s0, 400 }
  0x2d   : > { %p1115_p7 = scmp.ne.s32.totalorder %s1108_s12, %s1114_s13  ;;  %p1119_p10 = scmp.lt.s32.totalorder %s1108_s12, %s1526_s0 }
  0x2e   : > { %p1120_p1 = scmp.lt.s32.totalorder %s1118_s15, %s1114_s13 }
  0x2f   : > { %p1116_p8 = pnand %p1115_p7, %p1343_p5 }
  0x30   : > { %p1121_p0 = por %p1120_p1, %p1119_p10 }
  0x31   : > { %p1117_p9 = pneg %p1116_p8 }
  0x33   : > { %p1122_p3 = pnand %p1121_p0, %p1117_p9 }
  0x35   : > { %1125 = shalt.err (!%p1122_p3)
}
  0x36   : > { %s1126_s26 = sshra.s32 %s246_s1, 4  ;;  %s1221_s17 = smov [#allocation2]   ;;  %s1127_s26 = int_to_ptr.vmem [resolvable:$true] %s1126_s26 }
  0x37   : > { %s1133_s30 = scalar_lea.vmem %s1127_s26, %s1109_s29  ;;  %s1137_s16 = scalar_lea.vmem %s1221_s17, 512 }
  0x38   : > { %p1134_p7 = scmp.ne.s32.totalorder %s1127_s26, %s1133_s30  ;;  %p1139_p4 = scmp.lt.s32.totalorder %s1137_s16, %s1133_s30 }
  0x3a   : > { %p1135_p8 = pnand %p1134_p7, %p1343_p5 }
  0x3c   : > { %p1136_p2 = pneg %p1135_p8 }
  0x3e   : > { %p1141_p12 = pnand %p1139_p4, %p1136_p2 }
  0x40   : > { %1144 = shalt.err (!%p1141_p12)
}
  0x41   : > { %s1222_s12 = smov 256   ;;  %s1223_s13 = smov 16  }
  0x42   : > { %s1545_s15 = sshll.u32 %s1556_s28, 8 }
  0x43   : > { %251 = dma.hbm_to_vmem [thread:$0]  (%p1343_p5), %s1354_s19, %s1545_s15, %s246_s1, %s1340_s14, %s1222_s12, %s1222_s12, %s1223_s13  }
  0x44 PF: > { %257 = sbr.rel (%p1319_p13) target bundleno = 713 (0x2c9), region = 44  ;;  %s1383_s30 = sand.u32 (!%p1319_p13), 1, %s1208_s22  }
  0x45   : > { %s892_s26 = sshll.u32 (!%p1319_p13), %s1383_s30, 8  ;;  %s260_s29 = scalar_lea.sflag (!%p1319_p13), [#allocation3], %s1383_s30 }
  0x46   : > { %s1387_s18 = scalar_lea.vmem (!%p1319_p13), [#allocation2], %s892_s26 }
  0x49   : > { %1191 = dma.done.wait (%p1304_p6), %s260_s29, 4096  }
  0x4a   : > { %1193 = vsyncadd (%p1304_p6), %s260_s29, 4294963200  ;;  %p1546_p4 = scmp.eq.s32.totalorder %s1280_s25, 0 }
  0x4c   : > { %1195 = dma.done.wait (%p1546_p4), [#allocation6], 2048   ;;  %p1547_p12 = pmov %p1546_p4 }
  0x4d   : > { %v1003_v0 = vld [vmem:[#allocation5 + $0x38] sm:$0xff]  ;;  %v1002_v2 = vld [vmem:[#allocation5 + $0x30] sm:$0xff]  ;;  %v1001_v4 = vld [vmem:[#allocation5 + $0x28] sm:$0xff]  ;;  %vm747_vm0 = vcmask 523264   ;;  %s798_s17 = scalar_lea.hbm %s1532_s6, %s1280_s25  ;;  %s296_s16 = scalar_lea.vmem [#allocation7], %s1383_s30 }
  0x4e   : > { %1197 = vsyncadd (%p1547_p12), [#allocation6], 4294965248  ;;  %v1011_v1 = vld [vmem:[#allocation5 + $0x78] sm:$0xff]  ;;  %483 = vmatpush.bf16.msra.mxu0 %v1003_v0  ;;  %v1010_v3 = vld [vmem:[#allocation5 + $0x70] sm:$0xff]  ;;  %s800_s12 = sshll.u32 %s296_s16, 4  ;;  %s802_s13 = sshll.u32 %s798_s17, 4  ;;  %s801_s12 = int_to_ptr.vmem [resolvable:$true] %s800_s12  ;;  %s803_s13 = int_to_ptr.hbm [resolvable:$true] %s802_s13 }
  0x4f   : > { %532 = vmatpush.bf16.msra.mxu1 %v1011_v1  ;;  %v1009_v5 = vld [vmem:[#allocation5 + $0x68] sm:$0xff]  ;;  %v1000_v6 = vld [vmem:[#allocation5 + $0x20] sm:$0xff]  ;;  %v999_v8 = vld [vmem:[#allocation5 + $0x18] sm:$0xff]  ;;  %s790_s15 = scalar_lea.sflag [#allocation4], %s1383_s30  ;;  %s1160_s26 = sshra.s32 %s803_s13, 4  ;;  %s1161_s26 = int_to_ptr.hbm [resolvable:$true] %s1160_s26 }
  0x50   : > { %v1008_v7 = vld [vmem:[#allocation5 + $0x60] sm:$0xff]  ;;  %v1007_v9 = vld [vmem:[#allocation5 + $0x58] sm:$0xff]  ;;  %v998_v10 = vld [vmem:[#allocation5 + $0x10] sm:$0xff]  ;;  %s1162_s29 = scalar_lea.hbm %s1161_s26, 1  ;;  %s1166_s11 = scalar_lea.hbm %s1532_s6, 2 }
  0x51   : > { %v1006_v11 = vld [vmem:[#allocation5 + $0x50] sm:$0xff]  ;;  %v997_v12 = vld [vmem:[#allocation5 + $0x8] sm:$0xff]  ;;  %v996_v14 = vld [vmem:[#allocation5] sm:$0xff]  ;;  %p1163_p6 = scmp.ne.s32.totalorder %s1161_s26, %s1162_s29  ;;  %p1167_p5 = scmp.lt.s32.totalorder %s1161_s26, %s1532_s6 }
  0x52   : > { %484 = vmatpush.bf16.msra.mxu0 %v1002_v2  ;;  %v1005_v13 = vld [vmem:[#allocation5 + $0x48] sm:$0xff]  ;;  %v1004_v15 = vld [vmem:[#allocation5 + $0x40] sm:$0xff]  ;;  %v305_v17 = vld [vmem:[%s1387_s18 + $0x10] sm:$0xff]  ;;  %p1168_p9 = scmp.lt.s32.totalorder %s1166_s11, %s1162_s29 }
  0x53   : > { %533 = vmatpush.bf16.msra.mxu1 %v1010_v3  ;;  %v303_v16 = vld [vmem:[%s1387_s18] sm:$0xff]  ;;  %v304_v18 = vld [vmem:[%s1387_s18 + $0x8] sm:$0xff]  ;;  %v306_v19 = vld [vmem:[%s1387_s18 + $0x18] sm:$0xff]  ;;  %p1164_p13 = pnand %p1163_p6, %p1311_p11 }
  0x54   : > { %v335_v20 = vpack.c.bf16 %v305_v17, %v303_v16  ;;  %v336_v21 = vpack.c.bf16 %v306_v19, %v304_v18  ;;  %v307_v22 = vld [vmem:[%s1387_s18 + $0x20] sm:$0xff]  ;;  %v309_v23 = vld [vmem:[%s1387_s18 + $0x30] sm:$0xff]  ;;  %v308_v24 = vld [vmem:[%s1387_s18 + $0x28] sm:$0xff]  ;;  %p1169_p10 = por %p1168_p9, %p1167_p5 }
  0x55   : > { %v310_v25 = vld [vmem:[%s1387_s18 + $0x38] sm:$0xff]  ;;  %v337_v26 = vpack.c.bf16 %v309_v23, %v307_v22  ;;  %v311_v28 = vld [vmem:[%s1387_s18 + $0x40] sm:$0xff]  ;;  %v313_v29 = vld [vmem:[%s1387_s18 + $0x50] sm:$0xff]  ;;  %p1165_p2 = pneg %p1164_p13 }
  0x56   : > { %485 = vmatpush.bf16.msra.mxu0 %v1001_v4  ;;  %v338_v27 = vpack.c.bf16 %v310_v25, %v308_v24  ;;  %v312_v30 = vld [vmem:[%s1387_s18 + $0x48] sm:$0xff]  ;;  %v314_v31 = vld [vmem:[%s1387_s18 + $0x58] sm:$0xff]  ;;  %v339_v32 = vpack.c.bf16 %v313_v29, %v311_v28  ;;  %v315_v34 = vld [vmem:[%s1387_s18 + $0x60] sm:$0xff] }
  0x57   : > { %534 = vmatpush.bf16.msra.mxu1 %v1009_v5  ;;  %v340_v33 = vpack.c.bf16 %v314_v31, %v312_v30  ;;  %v317_v35 = vld [vmem:[%s1387_s18 + $0x70] sm:$0xff]  ;;  %v316_v36 = vld [vmem:[%s1387_s18 + $0x68] sm:$0xff]  ;;  %v318_v37 = vld [vmem:[%s1387_s18 + $0x78] sm:$0xff]  ;;  %p1170_p1 = pnand %p1169_p10, %p1165_p2 }
  0x58   : > { %v341_v38 = vpack.c.bf16 %v317_v35, %v315_v34  ;;  %v342_v39 = vpack.c.bf16 %v318_v37, %v316_v36  ;;  %v319_v40 = vld [vmem:[%s1387_s18 + $0x80] sm:$0xff]  ;;  %v321_v41 = vld [vmem:[%s1387_s18 + $0x90] sm:$0xff]  ;;  %v320_v42 = vld [vmem:[%s1387_s18 + $0x88] sm:$0xff] }
  0x59   : > { %v322_v43 = vld [vmem:[%s1387_s18 + $0x98] sm:$0xff]  ;;  %v343_v44 = vpack.c.bf16 %v321_v41, %v319_v40  ;;  %v323_v47 = vld [vmem:[%s1387_s18 + $0xa0] sm:$0xff]  ;;  %v325_v48 = vld [vmem:[%s1387_s18 + $0xb0] sm:$0xff] }
  0x5a   : > { %486 = vmatpush.bf16.msra.mxu0 %v1000_v6  ;;  %v344_v45 = vpack.c.bf16 %v322_v43, %v320_v42  ;;  %v1019_v46 = vld [vmem:[%s1529_s3 + $0x38] sm:$0xff]  ;;  %v324_v49 = vld [vmem:[%s1387_s18 + $0xa8] sm:$0xff]  ;;  %v345_v51 = vpack.c.bf16 %v325_v48, %v323_v47  ;;  %v1018_v53 = vld [vmem:[%s1529_s3 + $0x30] sm:$0xff] }
  0x5b   : > { %535 = vmatpush.bf16.msra.mxu1 %v1008_v7  ;;  %673 = vmatpush.bf16.msra.mxu2 %v1019_v46  ;;  %v326_v50 = vld [vmem:[%s1387_s18 + $0xb8] sm:$0xff]  ;;  %v1017_v54 = vld [vmem:[%s1529_s3 + $0x28] sm:$0xff]  ;;  %v1016_v55 = vld [vmem:[%s1529_s3 + $0x20] sm:$0xff] }
  0x5c   : > { %v346_v52 = vpack.c.bf16 %v326_v50, %v324_v49  ;;  %v327_v56 = vld [vmem:[%s1387_s18 + $0xc0] sm:$0xff]  ;;  %v329_v57 = vld [vmem:[%s1387_s18 + $0xd0] sm:$0xff]  ;;  %v328_v58 = vld [vmem:[%s1387_s18 + $0xc8] sm:$0xff] }
  0x5d   : > { %v330_v59 = vld [vmem:[%s1387_s18 + $0xd8] sm:$0xff]  ;;  %v347_v60 = vpack.c.bf16 %v329_v57, %v327_v56  ;;  %v1014_v63 = vld [vmem:[%s1529_s3 + $0x10] sm:$0xff]  ;;  %v1013_v0 = vld [vmem:[%s1529_s3 + $0x8] sm:$0xff] }
  0x5e   : > { %487 = vmatpush.bf16.msra.mxu0 %v999_v8  ;;  %v348_v61 = vpack.c.bf16 %v330_v59, %v328_v58  ;;  %v1015_v62 = vld [vmem:[%s1529_s3 + $0x18] sm:$0xff]  ;;  %v331_v1 = vld [vmem:[%s1387_s18 + $0xe0] sm:$0xff]  ;;  %v333_v2 = vld [vmem:[%s1387_s18 + $0xf0] sm:$0xff] }
  0x5f   : > { %536 = vmatpush.bf16.msra.mxu1 %v1007_v9  ;;  %674 = vmatpush.bf16.msra.mxu2 %v1018_v53  ;;  %v332_v3 = vld [vmem:[%s1387_s18 + $0xe8] sm:$0xff]  ;;  %v334_v4 = vld [vmem:[%s1387_s18 + $0xf8] sm:$0xff]  ;;  %v1012_v5 = vld [vmem:[%s1529_s3] sm:$0xff]  ;;  %v349_v6 = vpack.c.bf16 %v333_v2, %v331_v1 }
  0x60   : > { %v350_v7 = vpack.c.bf16 %v334_v4, %v332_v3 }
  0x62   : > { %488 = vmatpush.bf16.msra.mxu0 %v998_v10  ;;  %v1456_v10 = vld [vmem:[%s1528_s2] ss:$0 sm:$0xff] }
  0x63   : > { %537 = vmatpush.bf16.msra.mxu1 %v1006_v11  ;;  %675 = vmatpush.bf16.msra.mxu2 %v1017_v54 }
  0x66   : > { %489 = vmatpush.bf16.msra.mxu0 %v997_v12 }
  0x67   : > { %538 = vmatpush.bf16.msra.mxu1 %v1005_v13  ;;  %676 = vmatpush.bf16.msra.mxu2 %v1016_v55 }
  0x6a   : > { %490 = vmatpush.bf16.msra.mxu0 %v996_v14 }
  0x6b   : > { %539 = vmatpush.bf16.msra.mxu1 %v1004_v15  ;;  %677 = vmatpush.bf16.msra.mxu2 %v1015_v62 }
  0x6d   : > { %491 = vmatmul.bf16.vlgmr.msra.gmra.mxu0 %v335_v20 }
  0x6e   : > { %540 = vmatmul.bf16.vlgmr.msra.gmra.mxu1 %v336_v21 }
  0x6f   : > { %678 = vmatpush.bf16.msra.mxu2 %v1014_v63 }
  0x73   : > { %679 = vmatpush.bf16.msra.mxu2 %v1013_v0 }
  0x77   : > { %680 = vmatpush.bf16.msra.mxu2 %v1012_v5 }
  0x7d   : > { %496 = vmatmul.bf16.gmra.mxu0 %v337_v26 }
  0x7e   : > { %545 = vmatmul.bf16.gmra.mxu1 %v338_v27 }
  0x8d   : > { %501 = vmatmul.bf16.gmra.mxu0 %v339_v32 }
  0x8e   : > { %550 = vmatmul.bf16.gmra.mxu1 %v340_v33 }
  0x9d   : > { %506 = vmatmul.bf16.gmra.mxu0 %v341_v38 }
  0x9e   : > { %555 = vmatmul.bf16.gmra.mxu1 %v342_v39 }
  0xad   : > { %511 = vmatmul.bf16.gmra.mxu0 %v343_v44 }
  0xae   : > { %560 = vmatmul.bf16.gmra.mxu1 %v344_v45 }
  0xbd   : > { %516 = vmatmul.bf16.gmra.mxu0 %v345_v51 }
  0xbe   : > { %565 = vmatmul.bf16.gmra.mxu1 %v346_v52 }
  0xcd   : > { %521 = vmatmul.bf16.gmra.mxu0 %v347_v60 }
  0xce   : > { %570 = vmatmul.bf16.gmra.mxu1 %v348_v61 }
  0xdd   : > { %526 = vmatmul.bf16.gmra.mxu0 %v349_v6 }
  0xde   : > { %575 = vmatmul.bf16.gmra.mxu1 %v350_v7 }
  0xea   : > { %v492_v8 = vpop.f32.mrf.mxu0 }
  0xeb   : > { %v541_v9 = vpop.f32.mrf.mxu1  ;;  %v493_v11 = vadd.f32 %v1456_v10, %v492_v8 }
  0xed   : > { %v542_v14 = vadd.f32 %v541_v9, %v493_v11 }
  0xef   : > { %v581_v17 = vmax.f32 %v542_v14, 0.0 }
  0xf2   : > { %v494_v12 = vpop.f32.mrf.mxu0 }
  0xf3   : > { %v543_v13 = vpop.f32.mrf.mxu1  ;;  %v495_v15 = vadd.f32 %v1456_v10, %v494_v12 }
  0xf5   : > { %v544_v16 = vadd.f32 %v543_v13, %v495_v15 }
  0xf7   : > { %v582_v18 = vmax.f32 %v544_v16, 0.0 }
  0xf9   : > { %v597_v19 = vpack.c.bf16 %v582_v18, %v581_v17 }
  0xfa   : > { %v497_v20 = vpop.f32.mrf.mxu0 }
  0xfb   : > { %v546_v21 = vpop.f32.mrf.mxu1  ;;  %681 = vmatmul.bf16.vlgmr.msra.gmra.mxu2 %v597_v19  ;;  %v498_v22 = vadd.f32 %v1456_v10, %v497_v20 }
  0xfd   : > { %v547_v25 = vadd.f32 %v546_v21, %v498_v22 }
  0xff   : > { %v583_v28 = vmax.f32 %v547_v25, 0.0 }
 0x102   : > { %v499_v23 = vpop.f32.mrf.mxu0 }
 0x103   : > { %v548_v24 = vpop.f32.mrf.mxu1  ;;  %v500_v26 = vadd.f32 %v1456_v10, %v499_v23 }
 0x105   : > { %v549_v27 = vadd.f32 %v548_v24, %v500_v26 }
 0x107   : > { %v584_v29 = vmax.f32 %v549_v27, 0.0 }
 0x109   : > { %v598_v30 = vpack.c.bf16 %v584_v29, %v583_v28 }
 0x10a   : > { %v502_v31 = vpop.f32.mrf.mxu0 }
 0x10b   : > { %v551_v32 = vpop.f32.mrf.mxu1  ;;  %686 = vmatmul.bf16.gmra.mxu2 %v598_v30  ;;  %v503_v33 = vadd.f32 %v1456_v10, %v502_v31 }
 0x10d   : > { %v552_v36 = vadd.f32 %v551_v32, %v503_v33 }
 0x10f   : > { %v585_v39 = vmax.f32 %v552_v36, 0.0 }
 0x112   : > { %v504_v34 = vpop.f32.mrf.mxu0 }
 0x113   : > { %v553_v35 = vpop.f32.mrf.mxu1  ;;  %v505_v37 = vadd.f32 %v1456_v10, %v504_v34 }
 0x115   : > { %v554_v38 = vadd.f32 %v553_v35, %v505_v37  ;;  %v1076_v35 = vld [vmem:[%s1530_s4] ss:$0 sm:$0xff] }
 0x117   : > { %v586_v40 = vmax.f32 %v554_v38, 0.0 }
 0x119   : > { %v599_v41 = vpack.c.bf16 %v586_v40, %v585_v39 }
 0x11a   : > { %v507_v42 = vpop.f32.mrf.mxu0 }
 0x11b   : > { %v556_v43 = vpop.f32.mrf.mxu1  ;;  %691 = vmatmul.bf16.gmra.mxu2 %v599_v41  ;;  %v508_v44 = vadd.f32 %v1456_v10, %v507_v42 }
 0x11d   : > { %v557_v47 = vadd.f32 %v556_v43, %v508_v44 }
 0x11f   : > { %v587_v50 = vmax.f32 %v557_v47, 0.0 }
 0x122   : > { %v509_v45 = vpop.f32.mrf.mxu0 }
 0x123   : > { %v558_v46 = vpop.f32.mrf.mxu1  ;;  %v510_v48 = vadd.f32 %v1456_v10, %v509_v45 }
 0x125   : > { %v559_v49 = vadd.f32 %v558_v46, %v510_v48 }
 0x127   : > { %v588_v51 = vmax.f32 %v559_v49, 0.0 }
 0x129   : > { %v600_v52 = vpack.c.bf16 %v588_v51, %v587_v50 }
 0x12a   : > { %v512_v53 = vpop.f32.mrf.mxu0 }
 0x12b   : > { %v561_v54 = vpop.f32.mrf.mxu1  ;;  %696 = vmatmul.bf16.gmra.mxu2 %v600_v52  ;;  %v513_v55 = vadd.f32 %v1456_v10, %v512_v53 }
 0x12d   : > { %v562_v58 = vadd.f32 %v561_v54, %v513_v55 }
 0x12f   : > { %v589_v61 = vmax.f32 %v562_v58, 0.0 }
 0x132   : > { %v514_v56 = vpop.f32.mrf.mxu0 }
 0x133   : > { %v563_v57 = vpop.f32.mrf.mxu1  ;;  %v515_v59 = vadd.f32 %v1456_v10, %v514_v56 }
 0x135   : > { %v564_v60 = vadd.f32 %v563_v57, %v515_v59 }
 0x137   : > { %v590_v62 = vmax.f32 %v564_v60, 0.0 }
 0x139   : > { %v601_v63 = vpack.c.bf16 %v590_v62, %v589_v61 }
 0x13a   : > { %v517_v0 = vpop.f32.mrf.mxu0 }
 0x13b   : > { %v566_v1 = vpop.f32.mrf.mxu1  ;;  %701 = vmatmul.bf16.gmra.mxu2 %v601_v63  ;;  %v518_v2 = vadd.f32 %v1456_v10, %v517_v0 }
 0x13d   : > { %v567_v5 = vadd.f32 %v566_v1, %v518_v2 }
 0x13f   : > { %v591_v8 = vmax.f32 %v567_v5, 0.0 }
 0x142   : > { %v519_v3 = vpop.f32.mrf.mxu0 }
 0x143   : > { %v568_v4 = vpop.f32.mrf.mxu1  ;;  %v520_v6 = vadd.f32 %v1456_v10, %v519_v3 }
 0x145   : > { %v569_v7 = vadd.f32 %v568_v4, %v520_v6 }
 0x147   : > { %v592_v9 = vmax.f32 %v569_v7, 0.0 }
 0x149   : > { %v602_v11 = vpack.c.bf16 %v592_v9, %v591_v8 }
 0x14a   : > { %v522_v12 = vpop.f32.mrf.mxu0 }
 0x14b   : > { %v571_v13 = vpop.f32.mrf.mxu1  ;;  %706 = vmatmul.bf16.gmra.mxu2 %v602_v11  ;;  %v523_v14 = vadd.f32 %v1456_v10, %v522_v12 }
 0x14d   : > { %v572_v17 = vadd.f32 %v571_v13, %v523_v14 }
 0x14f   : > { %v593_v20 = vmax.f32 %v572_v17, 0.0 }
 0x152   : > { %v524_v15 = vpop.f32.mrf.mxu0 }
 0x153   : > { %v573_v16 = vpop.f32.mrf.mxu1  ;;  %v525_v18 = vadd.f32 %v1456_v10, %v524_v15 }
 0x155   : > { %v574_v19 = vadd.f32 %v573_v16, %v525_v18 }
 0x157   : > { %v594_v21 = vmax.f32 %v574_v19, 0.0 }
 0x159   : > { %v603_v22 = vpack.c.bf16 %v594_v21, %v593_v20 }
 0x15a   : > { %v527_v23 = vpop.f32.mrf.mxu0 }
 0x15b   : > { %v576_v24 = vpop.f32.mrf.mxu1  ;;  %711 = vmatmul.bf16.gmra.mxu2 %v603_v22  ;;  %v528_v25 = vadd.f32 %v1456_v10, %v527_v23 }
 0x15d   : > { %v577_v27 = vadd.f32 %v576_v24, %v528_v25 }
 0x15f   : > { %v595_v31 = vmax.f32 %v577_v27, 0.0 }
 0x162   : > { %v529_v26 = vpop.f32.mrf.mxu0 }
 0x163   : > { %v530_v28 = vadd.f32 %v1456_v10, %v529_v26  ;;  %v578_v29 = vpop.f32.mrf.mxu1 }
 0x165   : > { %v579_v30 = vadd.f32 %v578_v29, %v530_v28 }
 0x167   : > { %v596_v32 = vmax.f32 %v579_v30, 0.0 }
 0x169   : > { %v604_v33 = vpack.c.bf16 %v596_v32, %v595_v31 }
 0x16b   : > { %716 = vmatmul.bf16.gmra.mxu2 %v604_v33 }
 0x17e   : > { %v682_v34 = vpop.f32.mrf.mxu2 }
 0x17f   : > { %v683_v36 = vadd.f32 %v1076_v35, %v682_v34 }
 0x181   : > { %v722_v39 = vmax.f32 %v683_v36, 0.0 }
 0x186   : > { %v684_v37 = vpop.f32.mrf.mxu2 }
 0x187   : > { %v685_v38 = vadd.f32 %v1076_v35, %v684_v37 }
 0x189   : > { %v723_v40 = vmax.f32 %v685_v38, 0.0 }
 0x18b   : > { %v1477_v41 = vpack.c.bf16 %v723_v40, %v722_v39 }
 0x18d   : > { %v752_v34 = vsel %vm747_vm0, %v1477_v41, 0 }
 0x18e   : > { %v687_v42 = vpop.f32.mrf.mxu2 }
 0x18f   : > { %v688_v10 = vadd.f32 %v1076_v35, %v687_v42 }
 0x191   : > { %v724_v45 = vmax.f32 %v688_v10, 0.0 }
 0x196   : > { %v689_v43 = vpop.f32.mrf.mxu2 }
 0x197   : > { %v690_v44 = vadd.f32 %v1076_v35, %v689_v43 }
 0x199   : > { %v725_v46 = vmax.f32 %v690_v44, 0.0 }
 0x19b   : > { %v740_v47 = vpack.c.bf16 %v725_v46, %v724_v45 }
 0x19d   : > { %v755_v33 = vsel %vm747_vm0, %v740_v47, 0 }
 0x19e   : > { %v692_v48 = vpop.f32.mrf.mxu2 }
 0x19f   : > { %v693_v49 = vadd.f32 %v1076_v35, %v692_v48 }
 0x1a1   : > { %v726_v52 = vmax.f32 %v693_v49, 0.0 }
 0x1a6   : > { %v694_v50 = vpop.f32.mrf.mxu2 }
 0x1a7   : > { %v695_v51 = vadd.f32 %v1076_v35, %v694_v50 }
 0x1a9   : > { %v727_v53 = vmax.f32 %v695_v51, 0.0 }
 0x1ab   : > { %v741_v54 = vpack.c.bf16 %v727_v53, %v726_v52 }
 0x1ad   : > { %v758_v32 = vsel %vm747_vm0, %v741_v54, 0 }
 0x1ae   : > { %v697_v55 = vpop.f32.mrf.mxu2 }
 0x1af   : > { %v698_v56 = vadd.f32 %v1076_v35, %v697_v55 }
 0x1b1   : > { %v728_v59 = vmax.f32 %v698_v56, 0.0 }
 0x1b6   : > { %v699_v57 = vpop.f32.mrf.mxu2 }
 0x1b7   : > { %v700_v58 = vadd.f32 %v1076_v35, %v699_v57 }
 0x1b9   : > { %v729_v60 = vmax.f32 %v700_v58, 0.0 }
 0x1bb   : > { %v742_v61 = vpack.c.bf16 %v729_v60, %v728_v59 }
 0x1bd   : > { %v761_v31 = vsel %vm747_vm0, %v742_v61, 0 }
 0x1be   : > { %v702_v62 = vpop.f32.mrf.mxu2 }
 0x1bf   : > { %v703_v63 = vadd.f32 %v1076_v35, %v702_v62 }
 0x1c1   : > { %v730_v2 = vmax.f32 %v703_v63, 0.0 }
 0x1c6   : > { %v704_v0 = vpop.f32.mrf.mxu2 }
 0x1c7   : > { %v705_v1 = vadd.f32 %v1076_v35, %v704_v0 }
 0x1c9   : > { %v731_v3 = vmax.f32 %v705_v1, 0.0 }
 0x1cb   : > { %v743_v4 = vpack.c.bf16 %v731_v3, %v730_v2 }
 0x1cd   : > { %v764_v30 = vsel %vm747_vm0, %v743_v4, 0 }
 0x1ce   : > { %v707_v5 = vpop.f32.mrf.mxu2 }
 0x1cf   : > { %v708_v24 = vadd.f32 %v1076_v35, %v707_v5 }
 0x1d1   : > { %v732_v27 = vmax.f32 %v708_v24, 0.0 }
 0x1d6   : > { %v709_v6 = vpop.f32.mrf.mxu2 }
 0x1d7   : > { %v710_v22 = vadd.f32 %v1076_v35, %v709_v6 }
 0x1d9   : > { %v733_v25 = vmax.f32 %v710_v22, 0.0 }
 0x1db   : > { %v744_v28 = vpack.c.bf16 %v733_v25, %v732_v27 }
 0x1dd   : > { %v767_v29 = vsel %vm747_vm0, %v744_v28, 0 }
 0x1de   : > { %v712_v7 = vpop.f32.mrf.mxu2 }
 0x1df   : > { %v713_v17 = vadd.f32 %v1076_v35, %v712_v7 }
 0x1e1   : > { %v734_v21 = vmax.f32 %v713_v17, 0.0 }
 0x1e6   : > { %v714_v8 = vpop.f32.mrf.mxu2 }
 0x1e7   : > { %v715_v14 = vadd.f32 %v1076_v35, %v714_v8 }
 0x1e9   : > { %v735_v19 = vmax.f32 %v715_v14, 0.0 }
 0x1eb   : > { %v745_v23 = vpack.c.bf16 %v735_v19, %v734_v21 }
 0x1ed   : > { %v770_v26 = vsel %vm747_vm0, %v745_v23, 0 }
 0x1ee   : > { %v717_v9 = vpop.f32.mrf.mxu2 }
 0x1ef   : > { %v718_v11 = vadd.f32 %v1076_v35, %v717_v9 }
 0x1f1   : > { %v736_v15 = vmax.f32 %v718_v11, 0.0 }
 0x1f6   : > { %v719_v12 = vpop.f32.mrf.mxu2 }
 0x1f7   : > { %v720_v13 = vadd.f32 %v1076_v35, %v719_v12  ;;  %v738_v35 = vld [vmem:[%s1531_s5] sm:$0x1] }
 0x1f9   : > { %v737_v16 = vmax.f32 %v720_v13, 0.0 }
 0x1fb   : > { %v746_v18 = vpack.c.bf16 %v737_v16, %v736_v15 }
 0x1fd   : > { %v773_v20 = vsel %vm747_vm0, %v746_v18, 0 }
 0x1fe   : > { %775 = vmatpush.bf16.xpose.msra.mxu3 %v773_v20 }
 0x206   : > { %776 = vmatpush.bf16.xpose.msra.mxu3 %v770_v26 }
 0x20e   : > { %777 = vmatpush.bf16.xpose.msra.mxu3 %v767_v29 }
 0x216   : > { %778 = vmatpush.bf16.xpose.msra.mxu3 %v764_v30 }
 0x21e   : > { %779 = vmatpush.bf16.xpose.msra.mxu3 %v761_v31 }
 0x226   : > { %780 = vmatpush.bf16.xpose.msra.mxu3 %v758_v32 }
 0x22e   : > { %781 = vmatpush.bf16.xpose.msra.mxu3 %v755_v33 }
 0x236   : > { %782 = vmatpush.bf16.xpose.msra.mxu3 %v752_v34 }
 0x23d   : > { %990 = vmatmul.msk.bf16.vlgmr.msra.gmra.mxu3 %vm747_vm0, %v738_v35 }
 0x2c0   : > { %v784_v36 = vpop.f32.mrf.mxu3 }
 0x2c1   : > { %788 = vst [vmem:[%s296_s16] sm:$0x1] %v784_v36 }
 0x2c2   : > { %1173 = shalt.err (!%p1170_p1)
}
 0x2c3   : > { %1025 = dma.vmem_to_hbm [thread:$0]  (%p1311_p11), %s801_s12, 16, %s803_s13, %s790_s15  }
 0x2c8   : > { %v786_v37 = vpop.f32.mrf.mxu3 }
 0x2c9 PF: > { %s814_s30 = sand.u32 1, %s1204_s21   ;;  %p1548_p0 = scmp.ne.s32.totalorder %s1541_s10, 0 }
 0x2ca   : > { %p1549_p3 = scmp.ge.s32.totalorder %s1216_s24, 2  ;;  %s815_s28 = scalar_lea.sflag [#allocation4], %s814_s30 }
 0x2cc   : > { %p1032_p7 = pnand %p1549_p3, %p1548_p0 }
 0x2ce   : > { %p1033_p8 = pneg %p1032_p7 }
 0x2d0   : > { %1199 = dma.done.wait (%p1033_p8), %s815_s28, 16  }
 0x2d1   : > { %1201 = vsyncadd (%p1033_p8), %s815_s28, 4294967280  ;;  %s1550_s14 = sld [smem:[#allocation11_spill]]  ;;  %p20_p4 = scmp.ge.s32.totalorder %s1284_s27, 4  }
 0x2d2   : > { %s1551_s21 = smov %s1208_s22  ;;  %s1552_s22 = smov %s1212_s23 }
 0x2d3   : > { %s1554_s24 = smov %s1284_s27  ;;  %22 = sbr.rel (!%p20_p4) target bundleno = 8 (0x8), region = 93 }
 0x2d7   : > { %s1553_s23 = smov %s1550_s14 }
 0x2d8   :  { %820 = vsyncpa [#allocation3], 1 }
 0x2d9   :  { %822 = vsyncpa [#allocation3 + $0x1], 1 }
 0x2da   :  { %823 = vsyncpa [#allocation6], 1 }
 0x2db   :  { %824 = vsyncpa [#allocation4], 1 }
 0x2dc   :  { %826 = vsyncpa [#allocation4 + $0x1], 1 }

</bundles_post_ra>
